<compile_context>
chip_gen: v6e
topology: v6e:2x2x1
jax: 0.10.0
libtpu: 0.0.40
codegen_flags: <defaults>
</compile_context>

<pallas_src>
import functools

import jax
import jax.numpy as jnp
from jax.experimental import pallas as pl
from jax.experimental.pallas import tpu as pltpu

_EPS = 1e-5  # torch.nn.BatchNorm1d default


# --------------------------------------------------------------------------- #
# Small helpers
# --------------------------------------------------------------------------- #
def _round_up(x, m):
    return ((x + m - 1) // m) * m


def _fold_bn(gamma, beta, mean, var, eps=_EPS):
    s = gamma / jnp.sqrt(var + eps)
    return s, beta - mean * s


def _silu(z):
    # SiLU with both the exp and the divide kept on the EUP slot.
    return z * pl.reciprocal(1.0 + jnp.exp(-z), approx=True)


def _vmem_limit_bytes():
    """Generation-aware budget: ~3/4 of per-core VMEM (96 MiB v5e/v6e, 48 MiB v7x)."""
    try:
        cap = int(pltpu.get_tpu_info().vmem_capacity_bytes)
    except Exception:  # fall back to the smallest (v7x) physical budget
        cap = 64 * 1024 * 1024
    return max(32 * 1024 * 1024, min((cap * 3) // 4, 112 * 1024 * 1024))


@functools.lru_cache(maxsize=None)
def _roll_is_numpy_like():
    """One-time probe of pltpu.roll's lane-rotation sign convention.

    Returns True if pltpu.roll(x, 1, axis=-1)[..., i] == x[..., i-1] (np.roll
    semantics).  Defensive: the two depthwise shift directions below must be
    paired with the correct conv taps.
    """
    def kernel(x_ref, o_ref):
        o_ref[...] = pltpu.roll(x_ref[...], 1, axis=1)

    x = jnp.tile(jnp.arange(128, dtype=jnp.float32)[None, :], (8, 1))
    y = pl.pallas_call(
        kernel, out_shape=jax.ShapeDtypeStruct((8, 128), jnp.float32))(x)
    return bool(y[0, 1] == 0.0)


# --------------------------------------------------------------------------- #
# Pallas kernel: grid = (batch, L-tile).  One (C, TL) channels-on-sublanes,
# length-on-lanes tile per step.
# --------------------------------------------------------------------------- #
def _mbconv_kernel(*refs, tl, l_total, n_lt, multi_tile, has_pad,
                   use_residual, sh_left, sh_right):
    if multi_tile:
        (xp_ref, x_ref, xn_ref, w1_ref, b1_ref, wd0_ref, wd1_ref, wd2_ref,
         b2_ref, w2_ref, b3_ref, o_ref) = refs
    else:
        (x_ref, w1_ref, b1_ref, wd0_ref, wd1_ref, wd2_ref,
         b2_ref, w2_ref, b3_ref, o_ref) = refs

    lt = pl.program_id(1)
    w1 = w1_ref[...]                                         # (H, Cin)  bf16
    b1 = b1_ref[...]                                         # (H, 1)    f32

    # ---- expand: 1x1 conv (BN1 scale folded into w1) + bias + SiLU ---------
    h = jnp.dot(w1, x_ref[...], preferred_element_type=jnp.float32)  # (H, tl)
    h = _silu(h + b1)

    # Zero the L-padding columns: the depthwise conv must see zero-padded h.
    lane = jax.lax.broadcasted_iota(jnp.int32, (1, tl), 1)
    if has_pad:
        h = jnp.where(lane < (l_total - lt * tl), h, 0.0)

    # ---- depthwise conv k=3, stride=1, padding=1 (BN2 folded into taps) ----
    # Taps are lane rotations (XLU slot); the single wrapped-around column per
    # direction is patched with the true halo value (neighbour tile or zero).
    left = pltpu.roll(h, sh_left, axis=1)                    # wants h[:, l-1]
    right = pltpu.roll(h, sh_right, axis=1)                  # wants h[:, l+1]

    if multi_tile:
        # Neighbour halo: 128-lane blocks of x pushed through the same folded
        # expand conv; only one column of each is actually used.
        hp = jnp.dot(w1, xp_ref[...], preferred_element_type=jnp.float32)
        hcol_l = _silu(hp[:, 127:128] + b1)                  # h at col lt*tl-1
        hcol_l = jnp.where(lt > 0, hcol_l, 0.0)
        hn = jnp.dot(w1, xn_ref[...], preferred_element_type=jnp.float32)
        hcol_r = _silu(hn[:, 0:1] + b1)                      # h at col lt*tl+tl
        hcol_r = jnp.where(lt < n_lt - 1, hcol_r, 0.0)
    else:
        hcol_l = 0.0
        hcol_r = 0.0
    left = jnp.where(lane == 0, hcol_l, left)
    right = jnp.where(lane == tl - 1, hcol_r, right)

    d = (wd0_ref[...] * left + wd1_ref[...] * h + wd2_ref[...] * right
         + b2_ref[...])
    d = _silu(d)

    # ---- project: 1x1 conv (BN3 scale folded into w2) + bias (+ residual) --
    y = jnp.dot(w2_ref[...], d.astype(jnp.bfloat16),
                preferred_element_type=jnp.float32)          # (Cout, tl)
    y = y + b3_ref[...]
    if use_residual:
        y = y + x_ref[...].astype(jnp.float32)
    o_ref[...] = y.astype(o_ref.dtype)


# --------------------------------------------------------------------------- #
# Wrapper: BN folding, L-tiling / padding, BlockSpecs.  No layout transposes.
# --------------------------------------------------------------------------- #
def mbconv1d_forward(x_ncl, params, *, stride=1, l_tile_cap=512):
    """x_ncl: (B, Cin, L) float32, PyTorch NCL layout.  Returns (B, Cout, L)."""
    assert stride == 1  # TODO(synk): stride>1 depthwise path not implemented
    B, Cin, L = x_ncl.shape
    H = params["w_expand"].shape[0]
    Cout = params["w_proj"].shape[0]
    use_residual = (Cin == Cout) and (stride == 1)

    # Fold BN scales into the conv weights; only per-channel biases remain.
    s1, b1 = _fold_bn(*params["bn1"])
    s2, b2 = _fold_bn(*params["bn2"])
    s3, b3 = _fold_bn(*params["bn3"])
    w1 = (params["w_expand"][:, :, 0] * s1[:, None]).astype(jnp.bfloat16)  # (H, Cin)
    wd = (params["w_dw"][:, 0, :] * s2[:, None]).astype(jnp.float32)       # (H, 3)
    w2 = (params["w_proj"][:, :, 0] * s3[:, None]).astype(jnp.bfloat16)    # (Cout, H)
    b1c = b1[:, None].astype(jnp.float32)                                  # (H, 1)
    b2c = b2[:, None].astype(jnp.float32)
    b3c = b3[:, None].astype(jnp.float32)
    wd0, wd1, wd2 = wd[:, 0:1], wd[:, 1:2], wd[:, 2:3]                     # (H, 1)

    # L tiling: lanes want multiples of 128; pad L up to a multiple of the
    # tile instead of requiring an exact divisor (no-op when already aligned).
    tl = _round_up(min(l_tile_cap, _round_up(L, 128)), 128)
    l_pad = _round_up(L, tl)
    n_lt = l_pad // tl
    multi_tile = n_lt > 1
    has_pad = l_pad != L

    x = x_ncl.astype(jnp.bfloat16)          # halves HBM reads / VMEM blocks
    if has_pad:
        x = jnp.pad(x, ((0, 0), (0, 0), (0, l_pad - L)))

    sh_left, sh_right = (1, tl - 1) if _roll_is_numpy_like() else (tl - 1, 1)
    kernel = functools.partial(
        _mbconv_kernel, tl=tl, l_total=L, n_lt=n_lt, multi_tile=multi_tile,
        has_pad=has_pad, use_residual=use_residual,
        sh_left=sh_left, sh_right=sh_right)

    q = tl // 128                    # 128-lane blocks per L tile
    nb = l_pad // 128                # total number of 128-lane blocks

    in_specs = []
    args = []
    if multi_tile:
        # Previous tile's trailing 128 columns (clamped at the left edge).
        in_specs.append(pl.BlockSpec(
            (None, Cin, 128), lambda b, l: (b, 0, jnp.maximum(l * q - 1, 0))))
        args.append(x)
    in_specs.append(pl.BlockSpec((None, Cin, tl), lambda b, l: (b, 0, l)))
    args.append(x)
    if multi_tile:
        # Next tile's leading 128 columns (clamped at the right edge).
        in_specs.append(pl.BlockSpec(
            (None, Cin, 128),
            lambda b, l: (b, 0, jnp.minimum((l + 1) * q, nb - 1))))
        args.append(x)
    in_specs += [
        pl.BlockSpec((H, Cin), lambda b, l: (0, 0)),     # expand weight (bf16)
        pl.BlockSpec((H, 1), lambda b, l: (0, 0)),       # bn1 bias
        pl.BlockSpec((H, 1), lambda b, l: (0, 0)),       # depthwise tap 0
        pl.BlockSpec((H, 1), lambda b, l: (0, 0)),       # depthwise tap 1
        pl.BlockSpec((H, 1), lambda b, l: (0, 0)),       # depthwise tap 2
        pl.BlockSpec((H, 1), lambda b, l: (0, 0)),       # bn2 bias
        pl.BlockSpec((Cout, H), lambda b, l: (0, 0)),    # project weight (bf16)
        pl.BlockSpec((Cout, 1), lambda b, l: (0, 0)),    # bn3 bias
    ]
    args += [w1, b1c, wd0, wd1, wd2, b2c, w2, b3c]

    out = pl.pallas_call(
        kernel,
        out_shape=jax.ShapeDtypeStruct((B, Cout, l_pad), jnp.float32),
        grid=(B, n_lt),
        in_specs=in_specs,
        out_specs=pl.BlockSpec((None, Cout, tl), lambda b, l: (b, 0, l)),
        compiler_params=pltpu.CompilerParams(
            dimension_semantics=("parallel", "parallel"),
            vmem_limit_bytes=_vmem_limit_bytes(),
        ),
    )(*args)
    return out[:, :, :L] if has_pad else out


# --------------------------------------------------------------------------- #
# Pure-JAX reference (lax.conv, PyTorch NCL semantics) for correctness check.
# --------------------------------------------------------------------------- #
def mbconv1d_reference(x, p):
    def bn(z, bn_p):
        g, b, m, v = bn_p
        return ((z - m[None, :, None]) / jnp.sqrt(v[None, :, None] + _EPS)
                * g[None, :, None] + b[None, :, None])

    dn = ("NCH", "OIH", "NCH")
    h = jax.lax.conv_general_dilated(x, p["w_expand"], (1,), "VALID",
                                     dimension_numbers=dn,
                                     precision=jax.lax.Precision.HIGHEST)
    h = bn(h, p["bn1"]); h = h * jax.nn.sigmoid(h)
    H = p["w_dw"].shape[0]
    d = jax.lax.conv_general_dilated(h, p["w_dw"], (1,), [(1, 1)],
                                     dimension_numbers=dn,
                                     feature_group_count=H,
                                     precision=jax.lax.Precision.HIGHEST)
    d = bn(d, p["bn2"]); d = d * jax.nn.sigmoid(d)
    y = jax.lax.conv_general_dilated(d, p["w_proj"], (1,), "VALID",
                                     dimension_numbers=dn,
                                     precision=jax.lax.Precision.HIGHEST)
    y = bn(y, p["bn3"])
    if x.shape[1] == y.shape[1]:
        y = x + y
    return y


# --------------------------------------------------------------------------- #
# Deterministic parameter init (PyTorch weight shapes).
# --------------------------------------------------------------------------- #
def init_params(key, in_channels, out_channels, expand_ratio=6):
    H = int(in_channels * expand_ratio)
    ks = jax.random.split(key, 6)

    def bn_params(k, c):
        k1, k2, k3, k4 = jax.random.split(k, 4)
        gamma = jax.random.uniform(k1, (c,), jnp.float32, 0.5, 1.5)
        beta = 0.1 * jax.random.normal(k2, (c,), jnp.float32)
        mean = 0.1 * jax.random.normal(k3, (c,), jnp.float32)
        var = jax.random.uniform(k4, (c,), jnp.float32, 0.5, 1.5)
        return (gamma, beta, mean, var)

    return {
        "w_expand": 0.3 * jax.random.normal(ks[0], (H, in_channels, 1), jnp.float32),
        "w_dw":     0.3 * jax.random.normal(ks[1], (H, 1, 3), jnp.float32),
        "w_proj":   0.3 * jax.random.normal(ks[2], (out_channels, H, 1), jnp.float32),
        "bn1": bn_params(ks[3], H),
        "bn2": bn_params(ks[4], H),
        "bn3": bn_params(ks[5], out_channels),
    }


if __name__ == "__main__":
    key = jax.random.PRNGKey(0)
    kx, kp, kx2, kp2 = jax.random.split(key, 4)

    # Test 1: tiny spec-sized shapes; in==out & stride==1 -> residual path.
    B, Cin, Cout, L = 2, 4, 4, 16
    x = jax.random.normal(kx, (B, Cin, L), jnp.float32)
    params = init_params(kp, Cin, Cout, expand_ratio=6)
    out = jax.block_until_ready(mbconv1d_forward(x, params))
    assert out.shape == (B, Cout, L)
    ref = mbconv1d_reference(x, params)
    err = float(jnp.max(jnp.abs(out - ref)))
    scale = float(jnp.max(jnp.abs(ref)))
    assert err <= 5e-2 * max(1.0, scale), \
        f"test1 mismatch vs reference: abs={err}, ref_scale={scale}"

    # Test 2: non-residual + multiple L tiles + tail masking (cap forces tl=128).
    B2, Cin2, Cout2, L2 = 2, 5, 8, 200
    x2 = jax.random.normal(kx2, (B2, Cin2, L2), jnp.float32)
    params2 = init_params(kp2, Cin2, Cout2, expand_ratio=4)
    out2 = jax.block_until_ready(mbconv1d_forward(x2, params2, l_tile_cap=128))
    assert out2.shape == (B2, Cout2, L2)
    ref2 = mbconv1d_reference(x2, params2)
    err2 = float(jnp.max(jnp.abs(out2 - ref2)))
    scale2 = float(jnp.max(jnp.abs(ref2)))
    assert err2 <= 5e-2 * max(1.0, scale2), \
        f"test2 mismatch vs reference: abs={err2}, ref_scale={scale2}"

    print("KERNEL_OK")
</pallas_src>

<mosaic_0001>
module attributes {stable_mosaic.version = 11 : i64} {
  func.func @kernel(%arg0: memref<8x128xf32, #tpu.memory_space<vmem>>, %arg1: memref<8x128xf32, #tpu.memory_space<vmem>>) attributes {dimension_semantics = [], scalar_prefetch = 0 : i64, scratch_operands = 0 : i64, tpu.core_type = #tpu.core_type<tc>} {
    %c0 = arith.constant 0 : index
    %c0_0 = arith.constant 0 : index
    %0 = vector.load %arg0[%c0, %c0_0] : memref<8x128xf32, #tpu.memory_space<vmem>>, vector<8x128xf32>
    %c1_i32 = arith.constant 1 : i32
    %1 = tpu.dynamic_rotate %0 by %c1_i32 dim 1 : vector<8x128xf32>, i32 -> vector<8x128xf32>
    %c0_1 = arith.constant 0 : index
    %c0_2 = arith.constant 0 : index
    %2 = vector.load %arg1[%c0_1, %c0_2] : memref<8x128xf32, #tpu.memory_space<vmem>>, vector<8x128xf32>
    tpu.vector_store %arg1[%c0_1, %c0_2], %1 {strides = array<i32>} : memref<8x128xf32, #tpu.memory_space<vmem>>, vector<8x128xf32>,
    return
  }
}

</mosaic_0001>

<bundles_post_ra>
// kernel: tpu_custom_call.1
= control target key start
LH: loop header
LB: loop body
LE: loop exit
PB: predicated region body
PF: predicated region fallthrough
CT: control target
= control target key end

     0   :  { %6 = vsyncpa [#allocation3], 0  ;;  %s106_s0 = inlined_call_operand.hbm [shape: f32[8,128], index: 0, kind: input, shape index: {}]   ;;  %s107_s1 = inlined_call_operand.hbm [shape: f32[8,128], index: 1, kind: output, shape index: {}]  }
   0x1   :  { %7 = vsyncpa [#allocation4], 0  ;;  %s87_s6 = smov [#allocation2]  }
   0x2   :  { %s14_s7 = sshll.u32 %s87_s6, 4  ;;  %s15_s7 = int_to_ptr.vmem [resolvable:$true] %s14_s7 }
   0x3   :  { %s51_s8 = scalar_lea.vmem %s15_s7, 128  ;;  %p56_p1 = scmp.lt.s32.totalorder %s15_s7, %s15_s7 }
   0x4   :  { %p52_p0 = scmp.ne.s32.totalorder %s15_s7, %s51_s8  ;;  %p57_p2 = scmp.lt.s32.totalorder %s51_s8, %s51_s8 }
   0x6   :  { %p58_p3 = por %p57_p2, %p56_p1 }
   0x8   :  { %p59_p4 = pnand %p58_p3, %p52_p0 }
   0xa   :  { %62 = shalt.err (!%p59_p4)
}
   0xb   :  { %17 = dma.hbm_to_vmem [thread:$0]  %s106_s0, 128, %s15_s7, [#allocation3]  }
   0xc   :  { %83 = dma.done.wait [#allocation3], 128  }
   0xd   :  { %84 = vsyncadd [#allocation3], 4294967168  ;;  %v21_v0 = vld [vmem:[#allocation2] sm:$0xff]  ;;  %s88_s11 = smov 1   ;;  %s89_s12 = smov [#allocation5]  }
   0xe   :  { %22 = vrot.lane.b32.xlu0 %v21_v0, %s88_s11  ;;  %s31_s13 = sshll.u32 %s89_s12, 4  ;;  %s32_s13 = int_to_ptr.vmem [resolvable:$true] %s31_s13 }
   0xf   :  { %s63_s14 = scalar_lea.vmem %s32_s13, 128  ;;  %p68_p6 = scmp.lt.s32.totalorder %s32_s13, %s32_s13 }
  0x10   :  { %p64_p5 = scmp.ne.s32.totalorder %s32_s13, %s63_s14  ;;  %p69_p7 = scmp.lt.s32.totalorder %s63_s14, %s63_s14 }
  0x12   :  { %p70_p8 = por %p69_p7, %p68_p6 }
  0x14   :  { %p71_p9 = pnand %p70_p8, %p64_p5 }
  0x80   :  { %v23_v1 = vpop.permute.xlu0 %22 }
  0x81   :  { %24 = vst [vmem:[#allocation5] sm:$0xff] %v23_v1 }
  0x82   :  { %74 = shalt.err (!%p71_p9)
}
  0x83   :  { %34 = dma.vmem_to_hbm [thread:$0]  %s32_s13, 128, %s107_s1, [#allocation4]  }
  0x84   :  { %85 = dma.done.wait [#allocation4], 128  }
  0x85   :  { %86 = vsyncadd [#allocation4], 4294967168 }
  0x86   :  { %38 = vsyncpa [#allocation3], 1 }
  0x87   :  { %39 = vsyncpa [#allocation4], 1 }

</bundles_post_ra>
